<compile_context>
chip_gen: v7x
topology: tpu7x:2x2x1
jax: 0.10.0
libtpu: 0.0.40
codegen_flags: <defaults>
</compile_context>

<pallas_src>
import functools
import math

import jax
import jax.numpy as jnp
import numpy as np
from jax.experimental import pallas as pl
from jax.experimental.pallas import tpu as pltpu

LANE = 128


# ----------------------------- Pallas kernel ------------------------------ #

def _quanv_kernel(w_ref, cw_ref, sw_ref, bias_ref, p_ref, out_ref, *,
                  n_filters, n_channels, kk, chunk, factorize):
    """One lane tile of the quanvolution per grid step.

    w_ref:    (F, KK)     SMEM  raw circuit angles          (direct path)
    cw_ref:   (F, KK)     SMEM  cos(angles)                 (factorized path)
    sw_ref:   (F, KK)     SMEM  sin(angles)                 (factorized path)
    bias_ref: (F,)        SMEM  per-filter bias
    p_ref:    (KK*C, TN)  VMEM  unfolded patch taps, row = k*C + c, lane-dense
    out_ref:  (F, TN)     VMEM  per-filter outputs for this lane tile
    """
    F, C, KK = n_filters, n_channels, kk
    tn = out_ref.shape[-1]
    off = 0
    while off < tn:                      # static lane-chunk loop: bounds live vregs
        cs = min(chunk, tn - off)
        acc = None
        for k in range(KK):              # static unroll over kernel taps (KK tiny)
            pk = p_ref[k * C:(k + 1) * C, off:off + cs]              # (C, cs)
            if factorize:
                # cos(p + w) = cos(p)cos(w) - sin(p)sin(w): EUP work shared
                # across filters, per-filter work is VPU-only.
                cpk = jnp.cos(pk)
                spk = jnp.sin(pk)
                parts = [cpk * cw_ref[f, k] - spk * sw_ref[f, k]
                         for f in range(F)]
                term = jnp.concatenate(parts, axis=0) if F > 1 else parts[0]
            else:
                # Small F: pack the per-filter angles along sublanes first so
                # the (expensive) cos runs on full 8-sublane vregs.
                ang = [pk + w_ref[f, k] for f in range(F)]
                ang = jnp.concatenate(ang, axis=0) if F > 1 else ang[0]  # (F*C, cs)
                term = jnp.cos(ang)
            acc = term if k == 0 else acc * term                      # (F*C, cs)
        # Channel reduction: segmented sublane reduce of the packed accumulator
        # + bias, then one lane-dense store of all filter rows for this chunk.
        rows = [jnp.sum(acc[f * C:(f + 1) * C, :], axis=0, keepdims=True)
                + bias_ref[f] for f in range(F)]
        res = jnp.concatenate(rows, axis=0) if F > 1 else rows[0]     # (F, cs)
        out_ref[:, off:off + cs] = res
        off += cs


# ------------------------------- JAX glue --------------------------------- #

def _ceil_to(a, b):
    return ((a + b - 1) // b) * b


def _unfold_lane_dense(x, kernel_sizes, strides):
    """torch.nn.functional.unfold equivalent, laid out as (KK*C, B*L).

    Row index = k*C + c with k = i*kw + j (row-major tap order, like unfold);
    lane index = b*h_iter*w_iter + hh*w_iter + ww.
    """
    B, C, H, W = x.shape
    kh, kw = kernel_sizes
    sh, sw = strides
    h_iter = (H - kh) // sh + 1
    w_iter = (W - kw) // sw + 1
    if (sh, sw) == (kh, kw) and H == kh * h_iter and W == kw * w_iter:
        # Non-overlapping patches (the canonical quanvolution config): a single
        # reshape+transpose builds the final layout -- one HBM pass, no
        # duplicated data.
        p = x.reshape(B, C, h_iter, kh, w_iter, kw)
        p = jnp.transpose(p, (3, 5, 1, 0, 2, 4))            # (kh, kw, C, B, h, w)
        p = p.reshape(kh * kw * C, B * h_iter * w_iter)
    else:
        # General strided case: tap-slice gather (KK copies of the input).
        # TODO(synk): for overlapping strides this could be fused into the
        # kernel (tap slicing on a VMEM-resident x block) to avoid the
        # KK-times-larger patch tensor round trip through HBM.
        taps = []
        for i in range(kh):
            for j in range(kw):
                t = x[:, :, i:i + sh * (h_iter - 1) + 1:sh,
                            j:j + sw * (w_iter - 1) + 1:sw]  # (B, C, h, w)
                taps.append(t.reshape(B, C, h_iter * w_iter))
        p = jnp.stack(taps, axis=0)                          # (KK, B, C, L)
        p = jnp.transpose(p, (0, 2, 1, 3))                   # (KK, C, B, L)
        p = p.reshape(kh * kw * C, B * h_iter * w_iter)
    return p, h_iter, w_iter


def quanvolution_forward(x, weights, bias, kernel_size, stride):
    """Forward pass matching Quanvolution2DTorchLayer.quanvolution_layer.

    x:       (B, C, H, W) NCHW
    weights: (F, KK) circuit parameters, F = number of quantum filters
    bias:    (F,)
    returns  (B, F, h_iter, w_iter) float32
    """
    ks = (kernel_size, kernel_size) if isinstance(kernel_size, int) else tuple(kernel_size)
    st = (stride, stride) if isinstance(stride, int) else tuple(stride)
    x = x.astype(jnp.float32)
    weights = weights.astype(jnp.float32)
    bias = bias.astype(jnp.float32)

    B, C, _, _ = x.shape
    F, KK = weights.shape
    assert KK == ks[0] * ks[1]

    patches, h_iter, w_iter = _unfold_lane_dense(x, ks, st)   # (KK*C, N)
    N = B * h_iter * w_iter

    # ---- lane tiling -------------------------------------------------------
    n128 = _ceil_to(N, LANE)
    # Keep the double-buffered input + output block far below the scoped-VMEM
    # defaults on every generation (v5e 16 MiB ... v7x 32 MiB / 64 MiB phys).
    bytes_per_lane = 2 * (KK * C + F) * 4
    tn_cap = max(LANE, ((8 * 1024 * 1024) // bytes_per_lane) // LANE * LANE)
    tn_target = min(2048, tn_cap)
    steps = max(1, -(-n128 // tn_target))
    if steps == 1 and n128 >= 2 * LANE:
        steps = 2                       # v7x megacore: keep >= 2 parallel steps
    tn = _ceil_to(-(-n128 // steps), LANE)
    n_pad = _ceil_to(n128, tn)          # pad N up to the tile, don't shrink it
    grid = (n_pad // tn,)

    if n_pad != N:
        patches = jnp.pad(patches, ((0, 0), (0, n_pad - N)))

    # In-kernel lane sub-chunk: bounds the live vreg working set even for big tn.
    packed_rows = max(F * C, 8)
    chunk = min(tn, max(1, min(4, 48 // packed_rows)) * LANE)

    # Angle-addition factorization only pays off when it saves EUP work (F > 2).
    # TODO(synk): for F >= ~8 the 2^KK cos/sin product-basis expansion would let
    # all filters + the channel sum run as one MXU matmul; not implemented.
    factorize = F > 2
    cw = jnp.cos(weights)
    sw = jnp.sin(weights)

    out = pl.pallas_call(
        functools.partial(_quanv_kernel, n_filters=F, n_channels=C, kk=KK,
                          chunk=chunk, factorize=factorize),
        out_shape=jax.ShapeDtypeStruct((F, n_pad), jnp.float32),
        grid=grid,
        in_specs=[
            pl.BlockSpec(memory_space=pltpu.SMEM),             # weights
            pl.BlockSpec(memory_space=pltpu.SMEM),             # cos(weights)
            pl.BlockSpec(memory_space=pltpu.SMEM),             # sin(weights)
            pl.BlockSpec(memory_space=pltpu.SMEM),             # bias
            pl.BlockSpec((KK * C, tn), lambda n: (0, n)),      # patch taps
        ],
        out_specs=pl.BlockSpec((F, tn), lambda n: (0, n)),
        compiler_params=pltpu.CompilerParams(
            dimension_semantics=("parallel",)),
    )(weights, cw, sw, bias, patches)

    out = out[:, :N]                                           # drop lane padding
    out = out.reshape(F, B, h_iter, w_iter)
    return jnp.transpose(out, (1, 0, 2, 3))                    # (B, F, h, w)


def reference_forward(x, weights, bias, kernel_size, stride):
    """Pure-JAX reference for correctness checking (direct cos(p + w) path)."""
    ks = (kernel_size, kernel_size) if isinstance(kernel_size, int) else tuple(kernel_size)
    st = (stride, stride) if isinstance(stride, int) else tuple(stride)
    B, C, H, W = x.shape
    kh, kw = ks
    sh, sw = st
    h_iter = (H - kh) // sh + 1
    w_iter = (W - kw) // sw + 1
    taps = []
    for i in range(kh):
        for j in range(kw):
            taps.append(x[:, :, i:i + sh * (h_iter - 1) + 1:sh,
                              j:j + sw * (w_iter - 1) + 1:sw])
    p = jnp.stack(taps, axis=2).astype(jnp.float32)            # (B,C,KK,h,w)
    p = p.reshape(B, C, kh * kw, h_iter * w_iter)              # (B,C,KK,L)
    vals = jnp.cos(p[:, :, None, :, :]
                   + weights[None, None, :, :, None].astype(jnp.float32))
    prod = jnp.prod(vals, axis=3)                              # (B, C, F, L)
    out = prod.sum(axis=1) + bias[None, :, None].astype(jnp.float32)
    return out.reshape(B, weights.shape[0], h_iter, w_iter)


# --------------------------------- main ------------------------------------ #

if __name__ == "__main__":
    B, C, H, W = 2, 4, 16, 16          # input_image_shape = (16, 16)
    kernel_size, stride = 2, 2         # canonical 2x2 quanvolution, 4 "qubits"
    n_filters = 2
    KK = kernel_size * kernel_size

    key = jax.random.PRNGKey(0)
    kx, kw = jax.random.split(key)
    x = jax.random.normal(kx, (B, C, H, W), dtype=jnp.float32)
    # init_method = uniform_(b=2*pi)  -> weights in [0, 2*pi)
    weights = jax.random.uniform(kw, (n_filters, KK), dtype=jnp.float32,
                                 minval=0.0, maxval=2.0 * math.pi)
    # self.bias = nn.Parameter(torch.ones(n_filters) * 0.1)
    bias = jnp.ones((n_filters,), dtype=jnp.float32) * 0.1

    out = quanvolution_forward(x, weights, bias, kernel_size, stride)
    out = jax.block_until_ready(out)

    ref = jax.block_until_ready(
        reference_forward(x, weights, bias, kernel_size, stride))

    assert out.shape == (B, n_filters, H // stride, W // stride), out.shape
    assert np.allclose(np.asarray(out), np.asarray(ref), atol=1e-5, rtol=1e-5)

    print("KERNEL_OK")
</pallas_src>

<mosaic_0001>
module attributes {stable_mosaic.version = 11 : i64} {
  func.func @_quanv_kernel(%arg0: i32, %arg1: memref<2x4xf32, #tpu.memory_space<smem>>, %arg2: memref<2x4xf32, #tpu.memory_space<smem>>, %arg3: memref<2x4xf32, #tpu.memory_space<smem>>, %arg4: memref<2xf32, #tpu.memory_space<smem>>, %arg5: memref<16x128xf32, #tpu.memory_space<vmem>>, %arg6: memref<2x128xf32, #tpu.memory_space<vmem>>) attributes {dimension_semantics = [#tpu.dimension_semantics<parallel>], iteration_bounds = array<i64: 1>, scalar_prefetch = 0 : i64, scratch_operands = 0 : i64, tpu.core_type = #tpu.core_type<tc>, window_params = [{transform_indices = @transform_0, window_bounds = array<i64: 2, 4>}, {transform_indices = @transform_1, window_bounds = array<i64: 2, 4>}, {transform_indices = @transform_2, window_bounds = array<i64: 2, 4>}, {transform_indices = @transform_3, window_bounds = array<i64: 2>}, {transform_indices = @transform_4, window_bounds = array<i64: 16, 128>}, {transform_indices = @transform_5, window_bounds = array<i64: 2, 128>}]} {
    %c0 = arith.constant 0 : index
    %c0_0 = arith.constant 0 : index
    %0 = vector.load %arg5[%c0, %c0_0] : memref<16x128xf32, #tpu.memory_space<vmem>>, vector<4x128xf32>
    %c0_1 = arith.constant 0 : index
    %c0_2 = arith.constant 0 : index
    %1 = memref.load %arg1[%c0_1, %c0_2] : memref<2x4xf32, #tpu.memory_space<smem>>
    %2 = vector.broadcast %1 : f32 to vector<4x128xf32>
    %3 = arith.addf %0, %2 : vector<4x128xf32>
    %c1 = arith.constant 1 : index
    %c0_3 = arith.constant 0 : index
    %4 = memref.load %arg1[%c1, %c0_3] : memref<2x4xf32, #tpu.memory_space<smem>>
    %5 = vector.broadcast %4 : f32 to vector<4x128xf32>
    %6 = arith.addf %0, %5 : vector<4x128xf32>
    %7 = tpu.concatenate %3, %6 in 0 : vector<4x128xf32>, vector<4x128xf32> -> vector<8x128xf32>
    %8 = math.cos %7 : vector<8x128xf32>
    %c4 = arith.constant 4 : index
    %c0_4 = arith.constant 0 : index
    %9 = vector.load %arg5[%c4, %c0_4] : memref<16x128xf32, #tpu.memory_space<vmem>>, vector<4x128xf32>
    %c0_5 = arith.constant 0 : index
    %c1_6 = arith.constant 1 : index
    %10 = memref.load %arg1[%c0_5, %c1_6] : memref<2x4xf32, #tpu.memory_space<smem>>
    %11 = vector.broadcast %10 : f32 to vector<4x128xf32>
    %12 = arith.addf %9, %11 : vector<4x128xf32>
    %c1_7 = arith.constant 1 : index
    %c1_8 = arith.constant 1 : index
    %13 = memref.load %arg1[%c1_7, %c1_8] : memref<2x4xf32, #tpu.memory_space<smem>>
    %14 = vector.broadcast %13 : f32 to vector<4x128xf32>
    %15 = arith.addf %9, %14 : vector<4x128xf32>
    %16 = tpu.concatenate %12, %15 in 0 : vector<4x128xf32>, vector<4x128xf32> -> vector<8x128xf32>
    %17 = math.cos %16 : vector<8x128xf32>
    %18 = arith.mulf %8, %17 : vector<8x128xf32>
    %c8 = arith.constant 8 : index
    %c0_9 = arith.constant 0 : index
    %19 = vector.load %arg5[%c8, %c0_9] : memref<16x128xf32, #tpu.memory_space<vmem>>, vector<4x128xf32>
    %c0_10 = arith.constant 0 : index
    %c2 = arith.constant 2 : index
    %20 = memref.load %arg1[%c0_10, %c2] : memref<2x4xf32, #tpu.memory_space<smem>>
    %21 = vector.broadcast %20 : f32 to vector<4x128xf32>
    %22 = arith.addf %19, %21 : vector<4x128xf32>
    %c1_11 = arith.constant 1 : index
    %c2_12 = arith.constant 2 : index
    %23 = memref.load %arg1[%c1_11, %c2_12] : memref<2x4xf32, #tpu.memory_space<smem>>
    %24 = vector.broadcast %23 : f32 to vector<4x128xf32>
    %25 = arith.addf %19, %24 : vector<4x128xf32>
    %26 = tpu.concatenate %22, %25 in 0 : vector<4x128xf32>, vector<4x128xf32> -> vector<8x128xf32>
    %27 = math.cos %26 : vector<8x128xf32>
    %28 = arith.mulf %18, %27 : vector<8x128xf32>
    %c12 = arith.constant 12 : index
    %c0_13 = arith.constant 0 : index
    %29 = vector.load %arg5[%c12, %c0_13] : memref<16x128xf32, #tpu.memory_space<vmem>>, vector<4x128xf32>
    %c0_14 = arith.constant 0 : index
    %c3 = arith.constant 3 : index
    %30 = memref.load %arg1[%c0_14, %c3] : memref<2x4xf32, #tpu.memory_space<smem>>
    %31 = vector.broadcast %30 : f32 to vector<4x128xf32>
    %32 = arith.addf %29, %31 : vector<4x128xf32>
    %c1_15 = arith.constant 1 : index
    %c3_16 = arith.constant 3 : index
    %33 = memref.load %arg1[%c1_15, %c3_16] : memref<2x4xf32, #tpu.memory_space<smem>>
    %34 = vector.broadcast %33 : f32 to vector<4x128xf32>
    %35 = arith.addf %29, %34 : vector<4x128xf32>
    %36 = tpu.concatenate %32, %35 in 0 : vector<4x128xf32>, vector<4x128xf32> -> vector<8x128xf32>
    %37 = math.cos %36 : vector<8x128xf32>
    %38 = arith.mulf %28, %37 : vector<8x128xf32>
    %39 = vector.extract_strided_slice %38 {offsets = [0, 0], sizes = [4, 128], strides = [1, 1]} : vector<8x128xf32> to vector<4x128xf32>
    %cst = arith.constant dense<0.000000e+00> : vector<128xf32>
    %40 = vector.multi_reduction <add>, %39, %cst [0] : vector<4x128xf32> to vector<128xf32>
    %41 = vector.shape_cast %40 : vector<128xf32> to vector<1x128xf32>
    %c0_17 = arith.constant 0 : index
    %42 = memref.load %arg4[%c0_17] : memref<2xf32, #tpu.memory_space<smem>>
    %43 = vector.broadcast %42 : f32 to vector<1x128xf32>
    %44 = arith.addf %41, %43 : vector<1x128xf32>
    %45 = vector.extract_strided_slice %38 {offsets = [4, 0], sizes = [4, 128], strides = [1, 1]} : vector<8x128xf32> to vector<4x128xf32>
    %cst_18 = arith.constant dense<0.000000e+00> : vector<128xf32>
    %46 = vector.multi_reduction <add>, %45, %cst_18 [0] : vector<4x128xf32> to vector<128xf32>
    %47 = vector.shape_cast %46 : vector<128xf32> to vector<1x128xf32>
    %c1_19 = arith.constant 1 : index
    %48 = memref.load %arg4[%c1_19] : memref<2xf32, #tpu.memory_space<smem>>
    %49 = vector.broadcast %48 : f32 to vector<1x128xf32>
    %50 = arith.addf %47, %49 : vector<1x128xf32>
    %51 = tpu.concatenate %44, %50 in 0 : vector<1x128xf32>, vector<1x128xf32> -> vector<2x128xf32>
    %c0_20 = arith.constant 0 : index
    %c0_21 = arith.constant 0 : index
    %52 = vector.load %arg6[%c0_20, %c0_21] : memref<2x128xf32, #tpu.memory_space<vmem>>, vector<2x128xf32>
    tpu.vector_store %arg6[%c0_20, %c0_21], %51 {strides = array<i32>} : memref<2x128xf32, #tpu.memory_space<vmem>>, vector<2x128xf32>,
    return
  }
  func.func @transform_0(%arg0: i32) -> (i32, i32) {
    %c0_i32 = arith.constant 0 : i32
    %c0_i32_0 = arith.constant 0 : i32
    %c0_i32_1 = arith.constant 0 : i32
    return %c0_i32, %c0_i32_0 : i32, i32
  }
  func.func @transform_1(%arg0: i32) -> (i32, i32) {
    %c0_i32 = arith.constant 0 : i32
    %c0_i32_0 = arith.constant 0 : i32
    %c0_i32_1 = arith.constant 0 : i32
    return %c0_i32, %c0_i32_0 : i32, i32
  }
  func.func @transform_2(%arg0: i32) -> (i32, i32) {
    %c0_i32 = arith.constant 0 : i32
    %c0_i32_0 = arith.constant 0 : i32
    %c0_i32_1 = arith.constant 0 : i32
    return %c0_i32, %c0_i32_0 : i32, i32
  }
  func.func @transform_3(%arg0: i32) -> i32 {
    %c0_i32 = arith.constant 0 : i32
    %c0_i32_0 = arith.constant 0 : i32
    return %c0_i32 : i32
  }
  func.func @transform_4(%arg0: i32) -> (i32, i32) {
    %c0_i32 = arith.constant 0 : i32
    %c0_i32_0 = arith.constant 0 : i32
    return %c0_i32, %arg0 : i32, i32
  }
  func.func @transform_5(%arg0: i32) -> (i32, i32) {
    %c0_i32 = arith.constant 0 : i32
    %c0_i32_0 = arith.constant 0 : i32
    return %c0_i32, %arg0 : i32, i32
  }
}

</mosaic_0001>

<bundles_post_ra>
// kernel: tpu_custom_call.1
= control target key start
LH: loop header
LB: loop body
LE: loop exit
PB: predicated region body
PF: predicated region fallthrough
CT: control target
= control target key end

     0   :  { %10 = vsyncpa [#allocation5], 0  ;;  %s1131_s0 = inlined_call_operand.hbm [shape: f32[2,4], index: 0, kind: input, shape index: {}]   ;;  %s1132_s1 = inlined_call_operand.vmem [shape: f32[2,4], index: 1, kind: input, shape index: {}]   ;;  %s1133_s2 = inlined_call_operand.vmem [shape: f32[2,4], index: 2, kind: input, shape index: {}]   ;;  %s1134_s3 = inlined_call_operand.vmem [shape: f32[2], index: 3, kind: input, shape index: {}]   ;;  %s1135_s4 = inlined_call_operand.hbm [shape: f32[16,128], index: 4, kind: input, shape index: {}]   ;;  %s1136_s5 = inlined_call_operand.hbm [shape: f32[2,128], index: 5, kind: output, shape index: {}]  }
   0x1   :  { %11 = vsyncpa [#allocation6], 0 }
   0x2   :  { %12 = vsyncpa [#allocation9], 0 }
   0x3   :  { %13 = vsyncpa [#allocation3], 0  ;;  %s39_s20 = sshll.u32 %s1133_s2, 4  ;;  %s40_s20 = int_to_ptr.vmem [resolvable:$true] %s39_s20 }
   0x4   :  { %14 = vsyncpa [#allocation4], 0  ;;  %s655_s21 = scalar_lea.vmem %s40_s20, 32  ;;  %p660_p1 = scmp.lt.s32.totalorder %s40_s20, %s40_s20 }
   0x5   :  { %p656_p0 = scmp.ne.s32.totalorder %s40_s20, %s655_s21  ;;  %p661_p2 = scmp.lt.s32.totalorder %s655_s21, %s655_s21 }
   0x7   :  { %p662_p3 = por %p661_p2, %p660_p1 }
   0x9   :  { %p663_p4 = pnand %p662_p3, %p656_p0 }
   0xb   :  { %666 = shalt.err (!%p663_p4)
}
   0xc   :  { %s755_s22 = smov [#allocation8]   ;;  %s667_s25 = scalar_lea.hbm %s1131_s0, 32 }
   0xd   :  { %42 = dma.vmem_to_smem %s40_s20, 32, %s755_s22, [#allocation9]  }
   0xe   :  { %p668_p5 = scmp.ne.s32.totalorder %s1131_s0, %s667_s25  ;;  %p671_p6 = scmp.lt.u32.totalorder %s667_s25, %s1131_s0 }
  0x10   :  { %p673_p7 = pnand %p671_p6, %p668_p5 }
  0x12   :  { %676 = shalt.err (!%p673_p7)
}
  0x13   :  { %s756_s29 = smov [#allocation2]   ;;  %s29_s9 = sshll.u32 %s1132_s1, 4  ;;  %s30_s9 = int_to_ptr.vmem [resolvable:$true] %s29_s9 }
  0x14   :  { %22 = dma.hbm_to_smem %s1131_s0, 32, %s756_s29, [#allocation5]  }
  0x15   :  { %s49_s12 = sshll.u32 %s1134_s3, 4  ;;  %s677_s13 = scalar_lea.vmem %s30_s9, 32  ;;  %s50_s12 = int_to_ptr.vmem [resolvable:$true] %s49_s12 }
  0x16   :  { %p678_p8 = scmp.ne.s32.totalorder %s30_s9, %s677_s13  ;;  %p682_p9 = scmp.lt.s32.totalorder %s30_s9, %s30_s9 }
  0x17   :  { %p683_p10 = scmp.lt.s32.totalorder %s677_s13, %s677_s13 }
  0x19   :  { %p684_p11 = por %p683_p10, %p682_p9 }
  0x1b   :  { %p685_p12 = pnand %p684_p11, %p678_p8 }
  0x1d   :  { %688 = shalt.err (!%p685_p12)
}
  0x1e   :  { %s757_s14 = smov [#allocation7]   ;;  %s689_s0 = scalar_lea.vmem %s50_s12, 16 }
  0x1f   :  { %32 = dma.vmem_to_smem %s30_s9, 32, %s757_s14, [#allocation6]  }
  0x20   :  { %p690_p13 = scmp.ne.s32.totalorder %s50_s12, %s689_s0  ;;  %p694_p0 = scmp.lt.s32.totalorder %s50_s12, %s50_s12 }
  0x21   :  { %p695_p1 = scmp.lt.s32.totalorder %s689_s0, %s689_s0 }
  0x23   :  { %p696_p2 = por %p695_p1, %p694_p0 }
  0x25   :  { %p697_p3 = pnand %p696_p2, %p690_p13 }
  0x27   :  { %700 = shalt.err (!%p697_p3)
}
  0x28   :  { %s758_s1 = smov [#allocation10]   ;;  %s759_s3 = smov [#allocation11]  }
  0x29   :  { %52 = dma.vmem_to_smem %s50_s12, 16, %s758_s1, [#allocation9]  }
  0x2a   :  { %s58_s15 = sshll.u32 %s759_s3, 4  ;;  %s701_s18 = scalar_lea.hbm %s1135_s4, 256  ;;  %s59_s15 = int_to_ptr.vmem [resolvable:$true] %s58_s15 }
  0x2b   :  { %p702_p4 = scmp.ne.s32.totalorder %s1135_s4, %s701_s18  ;;  %p705_p5 = scmp.lt.u32.totalorder %s701_s18, %s1135_s4 }
  0x2d   :  { %p707_p6 = pnand %p705_p5, %p702_p4 }
  0x2f   :  { %710 = shalt.err (!%p707_p6)
}
  0x30   :  { %s711_s23 = scalar_lea.vmem %s59_s15, 256  ;;  %p716_p8 = scmp.lt.s32.totalorder %s59_s15, %s59_s15 }
  0x31   :  { %p712_p7 = scmp.ne.s32.totalorder %s59_s15, %s711_s23  ;;  %p717_p9 = scmp.lt.s32.totalorder %s711_s23, %s711_s23 }
  0x33   :  { %p718_p10 = por %p717_p9, %p716_p8 }
  0x35   :  { %p719_p11 = pnand %p718_p10, %p712_p7 }
  0x37   :  { %722 = shalt.err (!%p719_p11)
}
  0x38   :  { %s760_s24 = smov 128   ;;  %s761_s25 = smov 8  }
  0x39   :  { %64 = dma.hbm_to_vmem [thread:$0]  %s1135_s4, 256, %s59_s15, [#allocation3], %s760_s24, %s760_s24, %s761_s25  }
  0x3a   :  { %745 = dma.done.wait [#allocation5], 32  }
  0x3b   :  { %746 = vsyncadd [#allocation5], 4294967264 }
  0x3c   :  { %747 = dma.done.wait [#allocation6], 32  }
  0x3d   :  { %748 = vsyncadd [#allocation6], 4294967264 }
  0x3e   :  { %749 = dma.done.wait [#allocation9], 48  }
  0x3f   :  { %750 = vsyncadd [#allocation9], 4294967248 }
  0x40   :  { %751 = dma.done.wait [#allocation3], 256  }
  0x41   :  { %752 = vsyncadd [#allocation3], 4294967040 }
  0x42   :  { %80 = sfence }
  0x43   :  { %s82_s2 = sld [smem:[#allocation2]]  ;;  %s590_s29 = sld [smem:[#allocation2 + $0x1]]  ;;  %v81_v0 = vld [vmem:[#allocation11] sm:$0xf]  ;;  %vm91_vm0 = vcmask 1043456  }
  0x44   :  { %s585_s28 = sld [smem:[#allocation2 + $0x80]]  ;;  %s591_s30 = sld [smem:[#allocation2 + $0x81]]  ;;  %v196_v5 = vld [vmem:[#allocation11 + $0x4] sm:$0xf]  ;;  %v311_v9 = vld [vmem:[#allocation11 + $0x8] sm:$0xf] }
  0x45   :  { %s596_s6 = sld [smem:[#allocation2 + $0x2]]  ;;  %v762_v42 = vmov 683565275   ;;  %v763_v44 = vmov 2475754826   ;;  %s900_s4 = sld [smem:[#allocation2 + $0x83]] }
  0x46   :  { %s597_s7 = sld [smem:[#allocation2 + $0x82]]  ;;  %v764_v46 = vmov 2131351028   ;;  %v765_v48 = vmov 2102212464   ;;  %s906_s8 = sld [smem:[#allocation2 + $0x3]] }
  0x47   :  { %v766_v50 = vmov 920167782   ;;  %v767_v58 = vmov 1326507024   ;;  %s548_s9 = sld [smem:[#allocation10]]  ;;  %s608_s10 = sld [smem:[#allocation10 + $0x1]] }
  0x48   :  { %s768_s11 = smov [#allocation12]  }
  0x49   :  { %v83_v1 = vstv %s82_s2  ;;  %v198_v7 = vstv %s590_s29  ;;  %s573_s12 = sshll.u32 %s768_s11, 4  ;;  %s574_s12 = int_to_ptr.vmem [resolvable:$true] %s573_s12 }
  0x4a   :  { %v86_v2 = vstv %s585_s28  ;;  %v84_v3 = vadd.f32 %v83_v1, %v81_v0  ;;  %v201_v8 = vstv %s591_s30  ;;  %v199_v12 = vadd.f32 %v198_v7, %v196_v5  ;;  %s723_s13 = scalar_lea.vmem %s574_s12, 32  ;;  %p728_p13 = scmp.lt.s32.totalorder %s574_s12, %s574_s12 }
  0x4b   :  { %v87_v4 = vadd.f32 %v86_v2, %v81_v0  ;;  %v313_v10 = vstv %s596_s6  ;;  %v202_v13 = vadd.f32 %v201_v8, %v196_v5  ;;  %p724_p12 = scmp.ne.s32.totalorder %s574_s12, %s723_s13  ;;  %p729_p0 = scmp.lt.s32.totalorder %s723_s13, %s723_s13 }
  0x4c   :  { %v316_v14 = vstv %s597_s7  ;;  %v314_v18 = vadd.f32 %v313_v10, %v311_v9 }
  0x4d   :  { %v89_v6 = vrot.slane %v87_v4, 4  ;;  %v204_v17 = vrot.slane %v202_v13, 4  ;;  %v317_v19 = vadd.f32 %v316_v14, %v311_v9  ;;  %p730_p1 = por %p729_p0, %p728_p13 }
  0x4f   :  { %v833_v11 = vsel %vm91_vm0, %v84_v3, %v89_v6  ;;  %v840_v22 = vsel %vm91_vm0, %v199_v12, %v204_v17  ;;  %v319_v23 = vrot.slane %v317_v19, 4  ;;  %p731_p2 = pnand %p730_p1, %p724_p12 }
  0x50   :  { %v93_v15 = vand.u32 2147483647, %v833_v11  ;;  %v96_v16 = vand.u32 2139095040, %v833_v11  ;;  %v207_v25 = vand.u32 2147483647, %v840_v22  ;;  %v210_v26 = vand.u32 2139095040, %v840_v22 }
  0x51   :  { %v845_v27 = vsel %vm91_vm0, %v314_v18, %v319_v23 }
  0x52   :  { %v97_v20 = vshrl.u32 %v96_v16, 23  ;;  %v100_v21 = vand.u32 8388607, %v93_v15  ;;  %v214_v29 = vand.u32 8388607, %v207_v25  ;;  %v211_v31 = vshrl.u32 %v210_v26, 23 }
  0x53   :  { %v325_v32 = vand.u32 2139095040, %v845_v27 }
  0x54   :  { %v586_v24 = vadd.s32 4294967169, %v97_v20  ;;  %v101_v30 = vor.u32 8388608, %v100_v21  ;;  %v592_v34 = vadd.s32 4294967169, %v211_v31  ;;  %v215_v35 = vor.u32 8388608, %v214_v29 }
  0x55   :  { %v326_v40 = vshrl.u32 %v325_v32, 23 }
  0x56   :  { %v103_v28 = vadd.s32 1, %v586_v24  ;;  %v850_v38 = vshll.u32 %v101_v30, 8  ;;  %v217_v39 = vadd.s32 1, %v592_v34  ;;  %v857_v52 = vshll.u32 %v215_v35, 8 }
  0x57   :  { %v598_v19 = vadd.s32 4294967169, %v326_v40 }
  0x58   :  { %vm104_vm1 = vcmp.gt.s32.totalorder %v103_v28, 0  ;;  %vm218_vm5 = vcmp.gt.s32.totalorder %v217_v39, 0 }
  0x59   :  { %v105_v33 = vsel %vm104_vm1, %v103_v28, 0  ;;  %v219_v1 = vsel %vm218_vm5, %v217_v39, 0 }
  0x5a   :  { %v106_v36 = vshrl.u32 %v105_v33, 5  ;;  %v107_v37 = vand.u32 31, %v105_v33  ;;  %v220_v9 = vshrl.u32 %v219_v1, 5  ;;  %v221_v14 = vand.u32 31, %v219_v1 }
  0x5c   :  { %v108_v41 = vsub.s32 32, %v107_v37  ;;  %v110_v43 = vshll.u32 %v762_v42, %v107_v37  ;;  %v113_v45 = vshll.u32 %v763_v44, %v107_v37  ;;  %v116_v47 = vshll.u32 %v764_v46, %v107_v37 }
  0x5d   :  { %v119_v49 = vshll.u32 %v765_v48, %v107_v37  ;;  %v122_v51 = vshll.u32 %v766_v50, %v107_v37  ;;  %vm125_vm2 = vcmp.lt.s32.totalorder %v106_v36, 1  ;;  %vm126_vm3 = vcmp.lt.s32.totalorder %v106_v36, 2 }
  0x5e   :  { %v109_v53 = vshrl.u32 %v762_v42, %v108_v41  ;;  %v111_v54 = vshrl.u32 %v763_v44, %v108_v41  ;;  %v114_v55 = vshrl.u32 %v764_v46, %v108_v41  ;;  %v117_v56 = vshrl.u32 %v765_v48, %v108_v41 }
  0x5f   :  { %v120_v57 = vshrl.u32 %v766_v50, %v108_v41  ;;  %v123_v59 = vshrl.u32 %v767_v58, %v108_v41  ;;  %vm128_vm4 = vcmp.lt.s32.totalorder %v106_v36, 4  ;;  %vm127_vm6 = vcmp.lt.s32.totalorder %v106_v36, 3 }
  0x60   :  { %v112_v60 = vor.u32 %v111_v54, %v110_v43  ;;  %v115_v61 = vor.u32 %v114_v55, %v113_v45  ;;  %v118_v62 = vor.u32 %v117_v56, %v116_v47  ;;  %v222_v26 = vsub.s32 32, %v221_v14 }
  0x61   :  { %v121_v63 = vor.u32 %v120_v57, %v119_v49  ;;  %v124_v0 = vor.u32 %v123_v59, %v122_v51  ;;  %v224_v28 = vshll.u32 %v762_v42, %v221_v14  ;;  %v227_v29 = vshll.u32 %v763_v44, %v221_v14 }
  0x62   :  { %v129_v2 = vsel %vm125_vm2, %v109_v53, %v112_v60  ;;  %v130_v3 = vsel %vm128_vm4, %v118_v62, 2102212464  ;;  %v133_v4 = vsel %vm125_vm2, %v112_v60, %v115_v61  ;;  %v137_v5 = vsel %vm125_vm2, %v115_v61, %v118_v62 }
  0x63   :  { %v131_v6 = vsel %vm127_vm6, %v115_v61, %v130_v3  ;;  %v134_v7 = vsel %vm128_vm4, %v121_v63, 920167782  ;;  %v138_v8 = vsel %vm128_vm4, %v124_v0, 1326507024  ;;  %v230_v30 = vshll.u32 %v764_v46, %v221_v14 }
  0x64   :  { %v132_v10 = vsel %vm126_vm3, %v129_v2, %v131_v6  ;;  %v135_v12 = vsel %vm127_vm6, %v118_v62, %v134_v7  ;;  %v139_v13 = vsel %vm127_vm6, %v121_v63, %v138_v8  ;;  %v233_v31 = vshll.u32 %v765_v48, %v221_v14 }
  0x65   :  { %v136_v16 = vsel %vm126_vm3, %v133_v4, %v135_v12  ;;  %v140_v17 = vsel %vm126_vm3, %v137_v5, %v139_v13  ;;  %v148_v18 = vmul.u32 %v850_v38, %v132_v10  ;;  %v236_v32 = vshll.u32 %v766_v50, %v221_v14 }
  0x66   :  { %v873_v20 = vmul.u32.u64.low %v850_v38, %v140_v17  ;;  %v874_v21 = vmul.u32.u64.high %v850_v38, %v140_v17, %v873_v20  ;;  %v877_v23 = vmul.u32.u64.low %v850_v38, %v136_v16  ;;  %v878_v24 = vmul.u32.u64.high %v850_v38, %v136_v16, %v877_v23 }
  0x67   :  { %vm239_vm7 = vcmp.lt.s32.totalorder %v220_v9, 1  ;;  %vm240_vm8 = vcmp.lt.s32.totalorder %v220_v9, 2  ;;  %v223_v33 = vshrl.u32 %v762_v42, %v222_v26  ;;  %v225_v34 = vshrl.u32 %v763_v44, %v222_v26 }
  0x68   :  { %v228_v35 = vshrl.u32 %v764_v46, %v222_v26  ;;  %v231_v36 = vshrl.u32 %v765_v48, %v222_v26  ;;  %vm150_vm9 = vc.u32 %v874_v21, %v877_v23  ;;  %v151_v37 = vadd.s32 1, %v878_v24 }
  0x69   :  { %v234_v38 = vshrl.u32 %v766_v50, %v222_v26  ;;  %vm241_vm10 = vcmp.lt.s32.totalorder %v220_v9, 3  ;;  %v226_v39 = vor.u32 %v225_v34, %v224_v28  ;;  %v237_v43 = vshrl.u32 %v767_v58, %v222_v26 }
  0x6a   :  { %v229_v40 = vor.u32 %v228_v35, %v227_v29  ;;  %v232_v41 = vor.u32 %v231_v36, %v230_v30  ;;  %v152_v45 = vsel %vm150_vm9, %v151_v37, %v878_v24  ;;  %vm242_vm11 = vcmp.lt.s32.totalorder %v220_v9, 4 }
  0x6b   :  { %v235_v47 = vor.u32 %v234_v38, %v233_v31  ;;  %v332_v49 = vadd.s32 1, %v598_v19  ;;  %v153_v51 = vadd.s32 %v152_v45, %v148_v18  ;;  %v238_v53 = vor.u32 %v237_v43, %v236_v32  ;;  %v426_v18 = vld [vmem:[#allocation11 + $0xc] sm:$0xf] }
  0x6c   :  { %v243_v54 = vsel %vm239_vm7, %v223_v33, %v226_v39  ;;  %v244_v55 = vsel %vm242_vm11, %v232_v41, 2102212464  ;;  %v247_v57 = vsel %vm239_vm7, %v226_v39, %v229_v40  ;;  %v251_v60 = vsel %vm239_vm7, %v229_v40, %v232_v41 }
  0x6d   :  { %v245_v56 = vsel %vm241_vm10, %v229_v40, %v244_v55  ;;  %v248_v59 = vsel %vm242_vm11, %v235_v47, 920167782  ;;  %v154_v61 = vadd.s32 536870912, %v153_v51  ;;  %v252_v63 = vsel %vm242_vm11, %v238_v53, 1326507024 }
  0x6e   :  { %v249_v62 = vsel %vm241_vm10, %v232_v41, %v248_v59  ;;  %v246_v0 = vsel %vm240_vm8, %v243_v54, %v245_v56  ;;  %v253_v2 = vsel %vm241_vm10, %v235_v47, %v252_v63  ;;  %vm333_vm12 = vcmp.gt.s32.totalorder %v332_v49, 0 }
  0x6f   :  { %v250_v1 = vsel %vm240_vm8, %v247_v57, %v249_v62  ;;  %v908_v3 = vshrl.u32 %v154_v61, 30  ;;  %v254_v4 = vsel %vm240_vm8, %v251_v60, %v253_v2  ;;  %v334_v10 = vsel %vm333_vm12, %v332_v49, 0 }
  0x70   :  { %v912_v5 = vmul.u32.u64.low %v857_v52, %v250_v1  ;;  %v913_v6 = vmul.u32.u64.high %v857_v52, %v250_v1, %v912_v5  ;;  %v917_v7 = vmul.u32.u64.low %v857_v52, %v254_v4  ;;  %v918_v8 = vmul.u32.u64.high %v857_v52, %v254_v4, %v917_v7 }
  0x71   :  { %v336_v12 = vand.u32 31, %v334_v10  ;;  %v156_v13 = vshll.u32 %v908_v3, 30  ;;  %v262_v14 = vmul.u32 %v857_v52, %v246_v0  ;;  %v322_v9 = vand.u32 2147483647, %v845_v27 }
  0x72   :  { %v265_v16 = vadd.s32 1, %v913_v6  ;;  %vm264_vm13 = vc.u32 %v918_v8, %v912_v5  ;;  %v431_v19 = vstv %s900_s4  ;;  %v428_v28 = vstv %s906_s8 }
  0x73   :  { %v337_v17 = vsub.s32 32, %v336_v12  ;;  %v928_v24 = vsub.s32 %v153_v51, %v156_v13  ;;  %v329_v29 = vand.u32 8388607, %v322_v9  ;;  %v335_v52 = vshrl.u32 %v334_v10, 5 }
  0x74   :  { %v266_v20 = vsel %vm264_vm13, %v265_v16, %v913_v6  ;;  %v339_v30 = vshll.u32 %v762_v42, %v336_v12  ;;  %v432_v31 = vadd.f32 %v431_v19, %v426_v18  ;;  %v342_v34 = vshll.u32 %v763_v44, %v336_v12 }
  0x75   :  { %v267_v26 = vadd.s32 %v266_v20, %v262_v14  ;;  %v340_v33 = vshrl.u32 %v763_v44, %v337_v17  ;;  %v343_v35 = vshrl.u32 %v764_v46, %v337_v17  ;;  %v345_v36 = vshll.u32 %v764_v46, %v336_v12 }
  0x76   :  { %v346_v37 = vshrl.u32 %v765_v48, %v337_v17  ;;  %v348_v38 = vshll.u32 %v765_v48, %v336_v12  ;;  %v349_v39 = vshrl.u32 %v766_v50, %v337_v17  ;;  %v159_v40 = vsub.s32 0, %v928_v24 }
  0x77   :  { %v268_v32 = vadd.s32 536870912, %v267_v26  ;;  %v429_v43 = vadd.f32 %v428_v28, %v426_v18  ;;  %v330_v45 = vor.u32 8388608, %v329_v29  ;;  %v351_v47 = vshll.u32 %v766_v50, %v336_v12 }
  0x78   :  { %v352_v49 = vshrl.u32 %v767_v58, %v337_v17  ;;  %v434_v51 = vrot.slane %v432_v31, 4  ;;  %v341_v54 = vor.u32 %v340_v33, %v339_v30  ;;  %v344_v55 = vor.u32 %v343_v35, %v342_v34 }
  0x79   :  { %v942_v41 = vshrl.u32 %v268_v32, 30  ;;  %v350_v56 = vor.u32 %v349_v39, %v348_v38  ;;  %v347_v57 = vor.u32 %v346_v37, %v345_v36  ;;  %vm354_vm14 = vcmp.lt.s32.totalorder %v335_v52, 1 }
  0x7a   :  { %vm357_vm15 = vcmp.lt.s32.totalorder %v335_v52, 4  ;;  %v587_v59 = vmin.u32 %v159_v40, %v928_v24  ;;  %v338_v61 = vshrl.u32 %v762_v42, %v337_v17  ;;  %vm356_vm1 = vcmp.lt.s32.totalorder %v335_v52, 3 }
  0x7b   :  { %v270_v53 = vshll.u32 %v942_v41, 30  ;;  %v353_v62 = vor.u32 %v352_v49, %v351_v47  ;;  %vm355_vm2 = vcmp.lt.s32.totalorder %v335_v52, 2  ;;  %v370_v63 = vshll.u32 %v330_v45, 8 }
  0x7c   :  { %v952_v0 = vsel %vm91_vm0, %v429_v43, %v434_v51  ;;  %v359_v2 = vsel %vm357_vm15, %v347_v57, 2102212464  ;;  %v362_v4 = vsel %vm354_vm14, %v341_v54, %v344_v55  ;;  %v363_v6 = vsel %vm357_vm15, %v350_v56, 920167782 }
  0x7d   :  { %v948_v60 = vsub.s32 %v267_v26, %v270_v53  ;;  %v364_v7 = vsel %vm356_vm1, %v347_v57, %v363_v6  ;;  %v161_v10 = vclz %v587_v59  ;;  %v358_v12 = vsel %vm354_vm14, %v338_v61, %v341_v54 }
  0x7e   :  { %v440_v13 = vand.u32 2139095040, %v952_v0  ;;  %v360_v16 = vsel %vm356_vm1, %v344_v55, %v359_v2  ;;  %v365_v17 = vsel %vm355_vm2, %v362_v4, %v364_v7  ;;  %v366_v18 = vsel %vm354_vm14, %v344_v55, %v347_v57 }
  0x7f   :  { %v273_v1 = vsub.s32 0, %v948_v60  ;;  %v367_v19 = vsel %vm357_vm15, %v353_v62, 1326507024  ;;  %v966_v20 = vmul.u32.u64.low %v370_v63, %v365_v17  ;;  %v967_v26 = vmul.u32.u64.high %v370_v63, %v365_v17, %v966_v20 }
  0x80   :  { %v368_v28 = vsel %vm356_vm1, %v350_v56, %v367_v19  ;;  %v588_v29 = vadd.s32 4294967294, %v161_v10  ;;  %v361_v30 = vsel %vm355_vm2, %v358_v12, %v360_v16  ;;  %v441_v32 = vshrl.u32 %v440_v13, 23 }
  0x81   :  { %v593_v14 = vmin.u32 %v273_v1, %v948_v60  ;;  %v369_v31 = vsel %vm355_vm2, %v366_v18, %v368_v28  ;;  %v380_v36 = vadd.s32 1, %v967_v26  ;;  %v377_v38 = vmul.u32 %v370_v63, %v361_v30 }
  0x82   :  { %v973_v34 = vmul.u32.u64.low %v370_v63, %v369_v31  ;;  %v974_v35 = vmul.u32.u64.high %v370_v63, %v369_v31, %v973_v34  ;;  %v604_v37 = vadd.s32 4294967169, %v441_v32  ;;  %vm589_vm3 = vcmp.lt.s32.totalorder %v588_v29, 0 }
  0x83   :  { %v275_v33 = vclz %v593_v14  ;;  %v164_v52 = vsel %vm589_vm3, 0, %v588_v29  ;;  %v437_v47 = vand.u32 2147483647, %v952_v0  ;;  %v149_v51 = vadd.s32 %v877_v23, %v874_v21 }
  0x84   :  { %v447_v39 = vadd.s32 1, %v604_v37  ;;  %vm379_vm4 = vc.u32 %v974_v35, %v966_v20  ;;  %v165_v53 = vsub.s32 32, %v164_v52  ;;  %v166_v61 = vshll.u32 %v928_v24, %v164_v52 }
  0x85   :  { %v594_v40 = vadd.s32 4294967294, %v275_v33  ;;  %v381_v43 = vsel %vm379_vm4, %v380_v36, %v967_v26  ;;  %v444_v57 = vand.u32 8388607, %v437_v47  ;;  %v169_v63 = vsub.s32 4294967266, %v164_v52 }
  0x86   :  { %vm448_vm5 = vcmp.gt.s32.totalorder %v447_v39, 0  ;;  %v382_v45 = vadd.s32 %v381_v43, %v377_v38  ;;  %v167_v62 = vshrl.u32 %v149_v51, %v165_v53  ;;  %v263_v17 = vadd.s32 %v912_v5, %v918_v8 }
  0x87   :  { %v449_v49 = vsel %vm448_vm5, %v447_v39, 0  ;;  %vm595_vm6 = vcmp.lt.s32.totalorder %v594_v40, 0  ;;  %v170_v16 = vadd.s32 127, %v169_v63  ;;  %v445_v29 = vor.u32 8388608, %v444_v57 }
  0x88   :  { %v383_v54 = vadd.s32 536870912, %v382_v45  ;;  %v451_v55 = vand.u32 31, %v449_v49  ;;  %v278_v1 = vsel %vm595_vm6, 0, %v594_v40  ;;  %v450_v4 = vshrl.u32 %v449_v49, 5 }
  0x89   :  { %v1003_v19 = vor.u32 %v167_v62, %v166_v61  ;;  %v283_v26 = vsub.s32 4294967266, %v278_v1  ;;  %v171_v5 = vshll.u32 %v170_v16, 23  ;;  %v280_v37 = vshll.u32 %v948_v60, %v278_v1 }
  0x8a   :  { %v983_v56 = vshrl.u32 %v383_v54, 30  ;;  %v452_v59 = vsub.s32 32, %v451_v55  ;;  %v454_v21 = vshll.u32 %v762_v42, %v451_v55  ;;  %v457_v23 = vshll.u32 %v763_v44, %v451_v55 }
  0x8b   :  { %v463_v10 = vshll.u32 %v765_v48, %v451_v55  ;;  %v460_v24 = vshll.u32 %v764_v46, %v451_v55  ;;  %v466_v18 = vshll.u32 %v766_v50, %v451_v55  ;;  %vm469_vm7 = vcmp.lt.s32.totalorder %v450_v4, 1 }
  0x8c   :  { %v385_v2 = vshll.u32 %v983_v56, 30  ;;  %v455_v6 = vshrl.u32 %v763_v44, %v452_v59  ;;  %v458_v7 = vshrl.u32 %v764_v46, %v452_v59  ;;  %v464_v12 = vshrl.u32 %v766_v50, %v452_v59 }
  0x8d   :  { %v461_v14 = vshrl.u32 %v765_v48, %v452_v59  ;;  %v467_v44 = vshrl.u32 %v767_v58, %v452_v59  ;;  %v453_v48 = vshrl.u32 %v762_v42, %v452_v59  ;;  %vm472_vm8 = vcmp.lt.s32.totalorder %v450_v4, 4 }
  0x8e   :  { %v995_v13 = vsub.s32 %v382_v45, %v385_v2  ;;  %v456_v30 = vor.u32 %v455_v6, %v454_v21  ;;  %v459_v31 = vor.u32 %v458_v7, %v457_v23  ;;  %v465_v32 = vor.u32 %v464_v12, %v463_v10 }
  0x8f   :  { %v462_v33 = vor.u32 %v461_v14, %v460_v24  ;;  %v279_v50 = vsub.s32 32, %v278_v1  ;;  %v468_v8 = vor.u32 %v467_v44, %v466_v18  ;;  %vm471_vm9 = vcmp.lt.s32.totalorder %v450_v4, 3 }
  0x90   :  { %v388_v28 = vsub.s32 0, %v995_v13  ;;  %v284_v58 = vadd.s32 127, %v283_v26  ;;  %vm470_vm10 = vcmp.lt.s32.totalorder %v450_v4, 2  ;;  %v477_v38 = vsel %vm469_vm7, %v456_v30, %v459_v31 }
  0x91   :  { %v474_v36 = vsel %vm472_vm8, %v462_v33, 2102212464  ;;  %v478_v39 = vsel %vm472_vm8, %v465_v32, 920167782  ;;  %v485_v40 = vshll.u32 %v445_v29, 8  ;;  %v378_v42 = vadd.s32 %v966_v20, %v974_v35 }
  0x92   :  { %v599_v46 = vmin.u32 %v388_v28, %v995_v13  ;;  %v473_v52 = vsel %vm469_vm7, %v453_v48, %v456_v30  ;;  %v479_v45 = vsel %vm471_vm9, %v462_v33, %v478_v39  ;;  %v475_v49 = vsel %vm471_vm9, %v459_v31, %v474_v36 }
  0x93   :  { %v480_v51 = vsel %vm470_vm10, %v477_v38, %v479_v45  ;;  %v481_v53 = vsel %vm469_vm7, %v459_v31, %v462_v33  ;;  %v482_v60 = vsel %vm472_vm8, %v468_v8, 1326507024  ;;  %v281_v54 = vshrl.u32 %v263_v17, %v279_v50 }
  0x94   :  { %v390_v34 = vclz %v599_v46  ;;  %v285_v55 = vshll.u32 %v284_v58, 23  ;;  %v483_v57 = vsel %vm471_vm9, %v465_v32, %v482_v60  ;;  %v172_v62 = vor.u32 4788187, %v171_v5 }
  0x95   :  { %v484_v20 = vsel %vm470_vm10, %v481_v53, %v483_v57  ;;  %v1022_v35 = vmul.u32.u64.low %v485_v40, %v480_v51  ;;  %v1023_v61 = vmul.u32.u64.high %v485_v40, %v480_v51, %v1022_v35  ;;  %v476_v2 = vsel %vm470_vm10, %v473_v52, %v475_v49 }
  0x96   :  { %v600_v43 = vadd.s32 4294967294, %v390_v34  ;;  %v1026_v21 = vmul.u32.u64.low %v485_v40, %v484_v20  ;;  %v1027_v23 = vmul.u32.u64.high %v485_v40, %v484_v20, %v1026_v21  ;;  %v282_v6 = vor.u32 %v281_v54, %v280_v37 }
  0x97   :  { %v286_v7 = vor.u32 4788187, %v285_v55  ;;  %v492_v14 = vmul.u32 %v485_v40, %v476_v2  ;;  %v495_v16 = vadd.s32 1, %v1023_v61  ;;  %v173_v17 = vand.u32 2147483647, %v172_v62 }
  0x98   :  { %vm601_vm11 = vcmp.lt.s32.totalorder %v600_v43, 0  ;;  %v175_v18 = vcvt.s32.f32 %v1003_v19  ;;  %vm494_vm12 = vc.u32 %v1027_v23, %v1022_v35  ;;  %v289_v26 = vcvt.s32.f32 %v282_v6 }
  0x99   :  { %v393_v59 = vsel %vm601_vm11, 0, %v600_v43  ;;  %v287_v4 = vand.u32 2147483647, %v286_v7  ;;  %v496_v28 = vsel %vm494_vm12, %v495_v16, %v1023_v61  ;;  %vm95_vm13 = vcmp.lt.s32.totalorder %v833_v11, 0 }
  0x9a   :  { %v394_v63 = vsub.s32 32, %v393_v59  ;;  %v398_v1 = vsub.s32 4294967266, %v393_v59  ;;  %v395_v12 = vshll.u32 %v995_v13, %v393_v59  ;;  %v497_v31 = vadd.s32 %v496_v28, %v492_v14 }
  0x9b   :  { %v176_v32 = vmul.f32 %v175_v18, %v173_v17  ;;  %v290_v13 = vmul.f32 %v289_v26, %v287_v4  ;;  %vm209_vm14 = vcmp.lt.s32.totalorder %v840_v22, 0  ;;  %vm1041_vm15 = vcmp.le.f32.partialorder %v93_v15, 0.7853982 }
  0x9c   :  { %v399_v10 = vadd.s32 127, %v398_v1  ;;  %v396_v24 = vshrl.u32 %v378_v42, %v394_v63  ;;  %v498_v46 = vadd.s32 536870912, %v497_v31  ;;  %vm1049_vm1 = vcmp.le.f32.partialorder %v207_v25, 0.7853982 }
  0x9d   :  { %v177_v50 = vxor.u32 2147483648, %v176_v32  ;;  %v291_v8 = vxor.u32 2147483648, %v290_v13  ;;  %vm324_vm2 = vcmp.lt.s32.totalorder %v845_v27, 0  ;;  %vm1064_vm3 = vcmp.le.f32.partialorder %v322_v9, 0.7853982 }
  0x9e   :  { %v400_v44 = vshll.u32 %v399_v10, 23  ;;  %v397_v29 = vor.u32 %v396_v24, %v395_v12  ;;  %v1034_v5 = vshrl.u32 %v498_v46, 30  ;;  %v179_v49 = vsub.s32 4, %v908_v3 }
  0x9f   :  { %v178_v37 = vsel %vm95_vm13, %v177_v50, %v176_v32  ;;  %v292_v40 = vsel %vm209_vm14, %v291_v8, %v290_v13  ;;  %v293_v60 = vsub.s32 4, %v942_v41  ;;  %v493_v54 = vadd.s32 %v1022_v35, %v1027_v23 }
  0xa0   :  { %v401_v30 = vor.u32 4788187, %v400_v44  ;;  %v404_v33 = vcvt.s32.f32 %v397_v29  ;;  %v500_v19 = vshll.u32 %v1034_v5, 30  ;;  %v181_v15 = vsel %vm1041_vm15, %v833_v11, %v178_v37 }
  0xa1   :  { %v295_v52 = vsel %vm1049_vm1, %v840_v22, %v292_v40  ;;  %639 = vcosq.f32 %v181_v15  ;;  %v180_v57 = vsel %vm95_vm13, %v179_v49, %v908_v3  ;;  %v294_v62 = vsel %vm209_vm14, %v293_v60, %v942_v41 }
  0xa2   :  { %v402_v48 = vand.u32 2147483647, %v401_v30  ;;  %v501_v34 = vsub.s32 %v497_v31, %v500_v19  ;;  %641 = vsinq.f32 %v181_v15  ;;  %v182_v1 = vsel %vm1041_vm15, 0, %v180_v57 }
  0xa3   :  { %643 = vcosq.f32 %v295_v52  ;;  %v408_v2 = vsub.s32 4, %v983_v56  ;;  %v296_v3 = vsel %vm1049_vm1, 0, %v294_v62  ;;  %v186_v10 = vand.u32 3, %v182_v1 }
  0xa4   :  { %v405_v58 = vmul.f32 %v404_v33, %v402_v48  ;;  %v503_v38 = vsub.s32 0, %v501_v34  ;;  %645 = vsinq.f32 %v295_v52  ;;  %v300_v17 = vand.u32 3, %v296_v3 }
  0xa5   :  { %v409_v14 = vsel %vm324_vm2, %v408_v2, %v983_v56  ;;  %vm1092_vm5 = vcmp.le.f32.partialorder %v437_v47, 0.7853982  ;;  %vm439_vm6 = vcmp.lt.s32.totalorder %v952_v0, 0  ;;  %vm188_vm7 = vcmp.eq.s32.totalorder %v186_v10, 0 }
  0xa6   :  { %v406_v42 = vxor.u32 2147483648, %v405_v58  ;;  %v605_v43 = vmin.u32 %v503_v38, %v501_v34  ;;  %v411_v26 = vsel %vm1064_vm3, 0, %v409_v14  ;;  %vm191_vm8 = vcmp.eq.s32.totalorder %v186_v10, 2 }
  0xa7   :  { %vm302_vm9 = vcmp.eq.s32.totalorder %v300_v17, 0  ;;  %vm305_vm10 = vcmp.eq.s32.totalorder %v300_v17, 2  ;;  %v523_v47 = vsub.s32 4, %v1034_v5  ;;  %v415_v13 = vand.u32 3, %v411_v26 }
  0xa8   :  { %v505_v45 = vclz %v605_v43  ;;  %v407_v51 = vsel %vm324_vm2, %v406_v42, %v405_v58  ;;  %vm187_vm11 = vcmp.lt.s32.totalorder %v186_v10, 2  ;;  %vm301_vm12 = vcmp.lt.s32.totalorder %v300_v17, 2 }
  0xa9   :  { %v410_v9 = vsel %vm1064_vm3, %v845_v27, %v407_v51  ;;  %v524_v37 = vsel %vm439_vm6, %v523_v47, %v1034_v5  ;;  %vm417_vm13 = vcmp.eq.s32.totalorder %v415_v13, 0  ;;  %vm420_vm14 = vcmp.eq.s32.totalorder %v415_v13, 2 }
  0xaa   :  { %v606_v53 = vadd.s32 4294967294, %v505_v45  ;;  %647 = vcosq.f32 %v410_v9  ;;  %vm185_vm15 = vweird.f32 %v833_v11  ;;  %vm299_vm1 = vweird.f32 %v840_v22 }
  0xab   :  { %649 = vsinq.f32 %v410_v9  ;;  %v640_v6 = vpop.eup %639  ;;  %v526_v40 = vsel %vm1092_vm5, 0, %v524_v37  ;;  %vm416_vm2 = vcmp.lt.s32.totalorder %v415_v13, 2  ;;  %vm414_vm3 = vweird.f32 %v845_v27 }
  0xac   :  { %vm607_vm4 = vcmp.lt.s32.totalorder %v606_v53, 0  ;;  %v642_v7 = vpop.eup %641  ;;  %v192_v4 = vxor.u32 2147483648, %v640_v6  ;;  %v530_v52 = vand.u32 3, %v526_v40  ;;  %v549_v3 = vstv %s548_s9 }
  0xad   :  { %v508_v55 = vsel %vm607_vm4, 0, %v606_v53  ;;  %v644_v41 = vpop.eup %643  ;;  %v189_v29 = vxor.u32 2147483648, %v642_v7 }
  0xae   :  { %v509_v59 = vsub.s32 32, %v508_v55  ;;  %v510_v20 = vshll.u32 %v501_v34, %v508_v55  ;;  %v513_v61 = vsub.s32 4294967266, %v508_v55  ;;  %v646_v16 = vpop.eup %645  ;;  %v306_v30 = vxor.u32 2147483648, %v644_v41 }
  0xaf   :  { %v303_v56 = vxor.u32 2147483648, %v646_v16  ;;  %v193_v48 = vsel %vm191_vm8, %v192_v4, %v642_v7  ;;  %v190_v50 = vsel %vm188_vm7, %v640_v6, %v189_v29  ;;  %vm535_vm4 = vcmp.eq.s32.totalorder %v530_v52, 2 }
  0xb0   :  { %v511_v63 = vshrl.u32 %v493_v54, %v509_v59  ;;  %v514_v35 = vadd.s32 127, %v513_v61  ;;  %v307_v8 = vsel %vm305_vm10, %v306_v30, %v646_v16  ;;  %v194_v38 = vsel %vm187_vm11, %v190_v50, %v193_v48 }
  0xb1   :  { %v304_v19 = vsel %vm302_vm9, %v644_v41, %v303_v56  ;;  %v195_v43 = vsel %vm185_vm15, nan, %v194_v38  ;;  %vm531_vm7 = vcmp.lt.s32.totalorder %v530_v52, 2  ;;  %vm564_vm8 = vcmask 1040384  }
  0xb2   :  { %v512_v21 = vor.u32 %v511_v63, %v510_v20  ;;  %v515_v23 = vshll.u32 %v514_v35, 23  ;;  %v308_v39 = vsel %vm301_vm12, %v304_v19, %v307_v8 }
  0xb3   :  { %v309_v5 = vsel %vm299_vm1, nan, %v308_v39 }
  0xb4   :  { %v516_v12 = vor.u32 4788187, %v515_v23  ;;  %v519_v24 = vcvt.s32.f32 %v512_v21  ;;  %v648_v31 = vpop.eup %647  ;;  %v310_v25 = vmul.f32 %v309_v5, %v195_v43 }
  0xb5   :  { %v650_v46 = vpop.eup %649  ;;  %v421_v36 = vxor.u32 2147483648, %v648_v31 }
  0xb6   :  { %v517_v18 = vand.u32 2147483647, %v516_v12  ;;  %v418_v34 = vxor.u32 2147483648, %v650_v46  ;;  %v562_v12 = vstv %s608_s10 }
  0xb7   :  { %v422_v42 = vsel %vm420_vm14, %v421_v36, %v650_v46 }
  0xb8   :  { %v520_v28 = vmul.f32 %v519_v24, %v517_v18  ;;  %v419_v15 = vsel %vm417_vm13, %v648_v31, %v418_v34 }
  0xb9   :  { %v423_v45 = vsel %vm416_vm2, %v419_v15, %v422_v42 }
  0xba   :  { %v521_v32 = vxor.u32 2147483648, %v520_v28  ;;  %v424_v49 = vsel %vm414_vm3, nan, %v423_v45 }
  0xbb   :  { %v425_v60 = vmul.f32 %v424_v49, %v310_v25 }
  0xbc   :  { %v522_v33 = vsel %vm439_vm6, %v521_v32, %v520_v28  ;;  %vm532_vm6 = vcmp.eq.s32.totalorder %v530_v52, 0 }
  0xbd   :  { %v525_v58 = vsel %vm1092_vm5, %v952_v0, %v522_v33  ;;  %vm529_vm5 = vweird.f32 %v952_v0 }
  0xbe   :  { %651 = vcosq.f32 %v525_v58 }
  0xbf   :  { %653 = vsinq.f32 %v525_v58 }
  0xc8   :  { %v652_v11 = vpop.eup %651 }
  0xc9   :  { %v654_v51 = vpop.eup %653  ;;  %v536_v22 = vxor.u32 2147483648, %v652_v11 }
  0xca   :  { %v533_v53 = vxor.u32 2147483648, %v654_v51 }
  0xcb   :  { %v537_v54 = vsel %vm535_vm4, %v536_v22, %v654_v51 }
  0xcc   :  { %v534_v9 = vsel %vm532_vm6, %v652_v11, %v533_v53 }
  0xcd   :  { %v538_v55 = vsel %vm531_vm7, %v534_v9, %v537_v54 }
  0xce   :  { %v539_v57 = vsel %vm529_vm5, nan, %v538_v55 }
  0xcf   :  { %v540_v59 = vmul.f32 %v539_v57, %v425_v60 }
  0xd1   :  { %v541_v27 = vsel %vm91_vm0, %v540_v59, 0.0  ;;  %v552_v20 = vrot.slane %v540_v59, 4 }
  0xd2   :  { %v542_v61 = vrot.slane %v541_v27, 4 }
  0xd3   :  { %v554_v62 = vsel %vm91_vm0, %v552_v20, 0.0 }
  0xd4   :  { %v543_v63 = vadd.f32 %v542_v61, %v541_v27  ;;  %v555_v35 = vrot.slane %v554_v62, 4 }
  0xd6   :  { %v544_v1 = vrot.slane %v543_v63, 2  ;;  %v556_v2 = vadd.f32 %v555_v35, %v554_v62 }
  0xd8   :  { %v545_v21 = vadd.f32 %v544_v1, %v543_v63  ;;  %v557_v23 = vrot.slane %v556_v2, 2 }
  0xda   :  { %v546_v0 = vrot.slane %v545_v21, 1  ;;  %v558_v6 = vadd.f32 %v557_v23, %v556_v2 }
  0xdc   :  { %v547_v7 = vadd.f32 %v546_v0, %v545_v21  ;;  %v559_v10 = vrot.slane %v558_v6, 1 }
  0xde   :  { %v550_v24 = vadd.f32 %v549_v3, %v547_v7  ;;  %v560_v41 = vadd.f32 %v559_v10, %v558_v6 }
  0xe0   :  { %v563_v14 = vadd.f32 %v562_v12, %v560_v41 }
  0xe2   :  { %v565_v16 = vsel %vm564_vm8, %v550_v24, %v563_v14 }
  0xe3   :  { %566 = vst [vmem:[#allocation12] sm:$0x3] %v565_v16 }
  0xe4   :  { %734 = shalt.err (!%p731_p2)
}
  0xe5   :  { %s735_s1 = scalar_lea.hbm %s1136_s5, 32 }
  0xe6   :  { %p736_p3 = scmp.ne.s32.totalorder %s1136_s5, %s735_s1  ;;  %p739_p4 = scmp.lt.u32.totalorder %s735_s1, %s1136_s5 }
  0xe8   :  { %p741_p5 = pnand %p739_p4, %p736_p3 }
  0xea   :  { %744 = shalt.err (!%p741_p5)
}
  0xeb   :  { %576 = dma.vmem_to_hbm [thread:$0]  %s574_s12, 32, %s1136_s5, [#allocation4]  }
  0xec   :  { %753 = dma.done.wait [#allocation4], 32  }
  0xed   :  { %754 = vsyncadd [#allocation4], 4294967264 }
  0xee   :  { %580 = vsyncpa [#allocation3], 1 }
  0xef   :  { %581 = vsyncpa [#allocation4], 1 }
  0xf0   :  { %582 = vsyncpa [#allocation5], 1 }
  0xf1   :  { %583 = vsyncpa [#allocation6], 1 }
  0xf2   :  { %584 = vsyncpa [#allocation9], 1 }

</bundles_post_ra>
